<compile_context>
chip_gen: v5e
topology: v5e:2x2
jax: 0.10.0
libtpu: 0.0.40
codegen_flags: <defaults>
</compile_context>

<pallas_src>
import functools

import jax
import jax.numpy as jnp
from jax.experimental import pallas as pl
from jax.experimental.pallas import tpu as pltpu

_SMOOTH = 1e-6
_TILE_B = 32                         # covers bf16 (16) / int8,fp8 (32) packed min sublanes
_PER_INPUT_TILE_BYTES = 4 * 1024 * 1024   # ~4 MiB per input per buffer
_VMEM_LIMIT_BYTES = 32 * 1024 * 1024      # >= double-buffered footprint, <= v7x physical


def _dice_partial_kernel(p_ref, t_ref, inter_ref, pt_ref, *,
                         n, tile_n, kps, needs_mask):
    # p_ref, t_ref       : (tile_b, tile_n) input tiles (native dtype) in VMEM
    # inter_ref, pt_ref  : (1, tile_b, 1) f32 accumulators, resident across the
    #                      innermost ('arbitrary') k axis of the grid.
    k = pl.program_id(2)

    p = p_ref[...].astype(jnp.float32)
    t = t_ref[...].astype(jnp.float32)

    if needs_mask:
        # Zero out lanes past the logical end of the row.  k_global is computed
        # from the *unclamped* grid position, so a duplicate block fetched by a
        # clamped index_map (fully past-the-end split tail) masks to all-zero.
        k_global = pl.program_id(1) * kps + k
        cols = k_global * tile_n + jax.lax.broadcasted_iota(jnp.int32, p.shape, 1)
        valid = cols < n
        p = jnp.where(valid, p, 0.0)
        t = jnp.where(valid, t, 0.0)

    # Per-row partial reductions for this tile (fused sum(p)+sum(t) as sum(p+t)).
    inter = jnp.sum(p * t, axis=1, keepdims=True)[None]   # (1, tile_b, 1)
    pt = jnp.sum(p + t, axis=1, keepdims=True)[None]      # (1, tile_b, 1)

    @pl.when(k == 0)
    def _():
        inter_ref[...] = jnp.zeros_like(inter_ref)
        pt_ref[...] = jnp.zeros_like(pt_ref)

    inter_ref[...] += inter
    pt_ref[...] += pt


def dice_loss(pred, target, *, _tile_n_override=None):
    """Pallas TPU implementation of DiceLoss.forward(pred, target).

    `_tile_n_override` is test-only: forces a smaller lane tile so the
    multi-block / split / ragged-tail paths can be exercised at small shapes.
    """
    assert pred.shape == target.shape
    b = pred.shape[0]

    # Flatten row-major, same semantics as torch .view(B, -1).  Native dtype.
    p2 = jnp.reshape(pred, (b, -1))
    t2 = jnp.reshape(target, (b, -1))
    n = p2.shape[1]

    # Batch tile: 32 when b is large, otherwise the full batch (block dims equal
    # to the full array dim are always legal).
    tile_b = b if b < _TILE_B else _TILE_B

    # Lane tile: full row if it fits the per-input budget (then no mask is ever
    # needed), else a 128-aligned tile of ~4 MiB per input per buffer.
    itemsize = max(jnp.dtype(p2.dtype).itemsize, jnp.dtype(t2.dtype).itemsize)
    max_tile_n = max(128, (_PER_INPUT_TILE_BYTES // (tile_b * itemsize)) // 128 * 128)
    if _tile_n_override is not None:
        max_tile_n = _tile_n_override
    tile_n = n if n <= max_tile_n else max_tile_n

    nb = pl.cdiv(b, tile_b)
    nk = pl.cdiv(n, tile_n)

    # Split the reduction stream so v7x's two TensorCores both get work even
    # when there is a single batch block.  Free on single-TC generations.
    nsplit = 2 if nk >= 2 else 1
    kps = pl.cdiv(nk, nsplit)
    ragged_split = (nsplit * kps != nk)
    needs_mask = (n % tile_n != 0) or ragged_split

    last_k_block = nk - 1

    def in_map(i, s, k):
        kg = s * kps + k
        if ragged_split:
            # Clamp fully-out-of-range split-tail steps onto the last valid
            # block; the in-kernel mask zeroes their contribution.
            kg = jnp.minimum(kg, last_k_block)
        return (i, kg)

    out_map = lambda i, s, k: (s, i, 0)

    kernel = functools.partial(
        _dice_partial_kernel, n=n, tile_n=tile_n, kps=kps, needs_mask=needs_mask)

    bytes_in = b * n * (jnp.dtype(p2.dtype).itemsize + jnp.dtype(t2.dtype).itemsize)
    cost = pl.CostEstimate(
        flops=4 * b * n,
        transcendentals=0,
        bytes_accessed=bytes_in + 2 * nsplit * b * 4,
    )

    inter_out, pt_out = pl.pallas_call(
        kernel,
        out_shape=(
            jax.ShapeDtypeStruct((nsplit, b, 1), jnp.float32),
            jax.ShapeDtypeStruct((nsplit, b, 1), jnp.float32),
        ),
        grid=(nb, nsplit, kps),
        in_specs=[
            pl.BlockSpec((tile_b, tile_n), in_map),
            pl.BlockSpec((tile_b, tile_n), in_map),
        ],
        out_specs=(
            pl.BlockSpec((1, tile_b, 1), out_map),
            pl.BlockSpec((1, tile_b, 1), out_map),
        ),
        compiler_params=pltpu.CompilerParams(
            dimension_semantics=("parallel", "parallel", "arbitrary"),
            vmem_limit_bytes=_VMEM_LIMIT_BYTES,
        ),
        cost_estimate=cost,
    )(p2, t2)

    # Tiny epilogue in plain JAX: combine split partials, then dice + mean.
    inter = jnp.sum(inter_out[:, :, 0], axis=0)   # (b,)  sum(pred*target) per row
    pt = jnp.sum(pt_out[:, :, 0], axis=0)         # (b,)  sum(pred)+sum(target) per row
    dice_score = (2.0 * inter + _SMOOTH) / (pt + _SMOOTH)
    return 1.0 - jnp.sum(dice_score) / b


def _dice_loss_ref(pred, target):
    # Pure-JAX reference matching the PyTorch module exactly.
    smooth = 1e-6
    b = pred.shape[0]
    p = pred.reshape(b, -1).astype(jnp.float32)
    t = target.reshape(b, -1).astype(jnp.float32)
    inter = jnp.sum(p * t, axis=1)
    dice = (2.0 * inter + smooth) / (jnp.sum(p, axis=1) + jnp.sum(t, axis=1) + smooth)
    return 1.0 - jnp.sum(dice) / b


if __name__ == "__main__":
    key = jax.random.PRNGKey(0)
    k1, k2, k3, k4 = jax.random.split(key, 4)

    # Case 1: segmentation-style (B, C, H, W), single full-row tile.
    B, C, H, W = 2, 4, 16, 16
    pred = jax.nn.sigmoid(jax.random.normal(k1, (B, C, H, W), dtype=jnp.float32))
    target = (jax.random.uniform(k2, (B, C, H, W)) > 0.5).astype(jnp.float32)

    loss = dice_loss(pred, target)
    jax.block_until_ready(loss)
    ref = _dice_loss_ref(pred, target)
    assert jnp.allclose(loss, ref, atol=1e-5, rtol=1e-5), (loss, ref)

    # Case 2: B and N not multiples of (8, 128) — partial blocks, no pad.
    B2, C2, H2, W2 = 3, 3, 20, 20
    pred2 = jax.nn.sigmoid(jax.random.normal(k3, (B2, C2, H2, W2), dtype=jnp.float32))
    target2 = (jax.random.uniform(k4, (B2, C2, H2, W2)) > 0.5).astype(jnp.float32)

    loss2 = dice_loss(pred2, target2)
    jax.block_until_ready(loss2)
    ref2 = _dice_loss_ref(pred2, target2)
    assert jnp.allclose(loss2, ref2, atol=1e-5, rtol=1e-5), (loss2, ref2)

    # Case 3: force multiple N blocks -> exercises the 2-way reduction split
    # (even block count, no tail mask).
    loss3 = dice_loss(pred, target, _tile_n_override=256)
    jax.block_until_ready(loss3)
    assert jnp.allclose(loss3, ref, atol=1e-5, rtol=1e-5), (loss3, ref)

    # Case 4: force odd block count + ragged N tail -> exercises the clamped
    # split tail and the in-kernel lane mask.
    loss4 = dice_loss(pred2, target2, _tile_n_override=256)
    jax.block_until_ready(loss4)
    assert jnp.allclose(loss4, ref2, atol=1e-5, rtol=1e-5), (loss4, ref2)

    print("KERNEL_OK")
</pallas_src>

<mosaic_0001>
module attributes {stable_mosaic.version = 11 : i64} {
  func.func @_dice_partial_kernel(%arg0: i32, %arg1: i32, %arg2: i32, %arg3: memref<2x1024xf32, #tpu.memory_space<vmem>>, %arg4: memref<2x1024xf32, #tpu.memory_space<vmem>>, %arg5: memref<1x2x1xf32, #tpu.memory_space<vmem>>, %arg6: memref<1x2x1xf32, #tpu.memory_space<vmem>>) attributes {dimension_semantics = [#tpu.dimension_semantics<parallel>, #tpu.dimension_semantics<parallel>, #tpu.dimension_semantics<arbitrary>], iteration_bounds = array<i64: 1, 1, 1>, scalar_prefetch = 0 : i64, scratch_operands = 0 : i64, tpu.core_type = #tpu.core_type<tc>, window_params = [{transform_indices = @transform_0, window_bounds = array<i64: 2, 1024>}, {transform_indices = @transform_1, window_bounds = array<i64: 2, 1024>}, {transform_indices = @transform_2, window_bounds = array<i64: 1, 2, 1>}, {transform_indices = @transform_3, window_bounds = array<i64: 1, 2, 1>}]} {
    %c0 = arith.constant 0 : index
    %c0_0 = arith.constant 0 : index
    %0 = vector.load %arg3[%c0, %c0_0] : memref<2x1024xf32, #tpu.memory_space<vmem>>, vector<2x1024xf32>
    %c0_1 = arith.constant 0 : index
    %c0_2 = arith.constant 0 : index
    %1 = vector.load %arg4[%c0_1, %c0_2] : memref<2x1024xf32, #tpu.memory_space<vmem>>, vector<2x1024xf32>
    %2 = arith.mulf %0, %1 : vector<2x1024xf32>
    %cst = arith.constant dense<0.000000e+00> : vector<2xf32>
    %3 = vector.multi_reduction <add>, %2, %cst [1] : vector<2x1024xf32> to vector<2xf32>
    %4 = vector.shape_cast %3 : vector<2xf32> to vector<2x1xf32>
    %5 = vector.shape_cast %4 : vector<2x1xf32> to vector<1x2x1xf32>
    %6 = arith.addf %0, %1 : vector<2x1024xf32>
    %cst_3 = arith.constant dense<0.000000e+00> : vector<2xf32>
    %7 = vector.multi_reduction <add>, %6, %cst_3 [1] : vector<2x1024xf32> to vector<2xf32>
    %8 = vector.shape_cast %7 : vector<2xf32> to vector<2x1xf32>
    %9 = vector.shape_cast %8 : vector<2x1xf32> to vector<1x2x1xf32>
    %c0_i32 = arith.constant 0 : i32
    %10 = arith.cmpi eq, %arg2, %c0_i32 : i32
    %11 = arith.extui %10 : i1 to i32
    %c0_i32_4 = arith.constant 0 : i32
    %12 = arith.cmpi ne, %11, %c0_i32_4 : i32
    scf.if %12 {
      %cst_17 = arith.constant 0.000000e+00 : f32
      %19 = vector.broadcast %cst_17 : f32 to vector<1x2x1xf32>
      %c0_18 = arith.constant 0 : index
      %c0_19 = arith.constant 0 : index
      %c0_20 = arith.constant 0 : index
      %20 = vector.load %arg5[%c0_18, %c0_19, %c0_20] : memref<1x2x1xf32, #tpu.memory_space<vmem>>, vector<1x2x1xf32>
      tpu.vector_store %arg5[%c0_18, %c0_19, %c0_20], %19 {strides = array<i32>} : memref<1x2x1xf32, #tpu.memory_space<vmem>>, vector<1x2x1xf32>,
      %cst_21 = arith.constant 0.000000e+00 : f32
      %21 = vector.broadcast %cst_21 : f32 to vector<1x2x1xf32>
      %c0_22 = arith.constant 0 : index
      %c0_23 = arith.constant 0 : index
      %c0_24 = arith.constant 0 : index
      %22 = vector.load %arg6[%c0_22, %c0_23, %c0_24] : memref<1x2x1xf32, #tpu.memory_space<vmem>>, vector<1x2x1xf32>
      tpu.vector_store %arg6[%c0_22, %c0_23, %c0_24], %21 {strides = array<i32>} : memref<1x2x1xf32, #tpu.memory_space<vmem>>, vector<1x2x1xf32>,
    } else {
    }
    %c0_5 = arith.constant 0 : index
    %c0_6 = arith.constant 0 : index
    %c0_7 = arith.constant 0 : index
    %13 = vector.load %arg5[%c0_5, %c0_6, %c0_7] : memref<1x2x1xf32, #tpu.memory_space<vmem>>, vector<1x2x1xf32>
    %14 = arith.addf %13, %5 : vector<1x2x1xf32>
    %c0_8 = arith.constant 0 : index
    %c0_9 = arith.constant 0 : index
    %c0_10 = arith.constant 0 : index
    %15 = vector.load %arg5[%c0_8, %c0_9, %c0_10] : memref<1x2x1xf32, #tpu.memory_space<vmem>>, vector<1x2x1xf32>
    tpu.vector_store %arg5[%c0_8, %c0_9, %c0_10], %14 {strides = array<i32>} : memref<1x2x1xf32, #tpu.memory_space<vmem>>, vector<1x2x1xf32>,
    %c0_11 = arith.constant 0 : index
    %c0_12 = arith.constant 0 : index
    %c0_13 = arith.constant 0 : index
    %16 = vector.load %arg6[%c0_11, %c0_12, %c0_13] : memref<1x2x1xf32, #tpu.memory_space<vmem>>, vector<1x2x1xf32>
    %17 = arith.addf %16, %9 : vector<1x2x1xf32>
    %c0_14 = arith.constant 0 : index
    %c0_15 = arith.constant 0 : index
    %c0_16 = arith.constant 0 : index
    %18 = vector.load %arg6[%c0_14, %c0_15, %c0_16] : memref<1x2x1xf32, #tpu.memory_space<vmem>>, vector<1x2x1xf32>
    tpu.vector_store %arg6[%c0_14, %c0_15, %c0_16], %17 {strides = array<i32>} : memref<1x2x1xf32, #tpu.memory_space<vmem>>, vector<1x2x1xf32>,
    return
  }
  func.func @transform_0(%arg0: i32, %arg1: i32, %arg2: i32) -> (i32, i32) {
    %c1_i32 = arith.constant 1 : i32
    %0 = arith.muli %arg1, %c1_i32 : i32
    %1 = arith.addi %0, %arg2 : i32
    %c0_i32 = arith.constant 0 : i32
    return %arg0, %1 : i32, i32
  }
  func.func @transform_1(%arg0: i32, %arg1: i32, %arg2: i32) -> (i32, i32) {
    %c1_i32 = arith.constant 1 : i32
    %0 = arith.muli %arg1, %c1_i32 : i32
    %1 = arith.addi %0, %arg2 : i32
    %c0_i32 = arith.constant 0 : i32
    return %arg0, %1 : i32, i32
  }
  func.func @transform_2(%arg0: i32, %arg1: i32, %arg2: i32) -> (i32, i32, i32) {
    %c0_i32 = arith.constant 0 : i32
    %c0_i32_0 = arith.constant 0 : i32
    return %arg1, %arg0, %c0_i32 : i32, i32, i32
  }
  func.func @transform_3(%arg0: i32, %arg1: i32, %arg2: i32) -> (i32, i32, i32) {
    %c0_i32 = arith.constant 0 : i32
    %c0_i32_0 = arith.constant 0 : i32
    return %arg1, %arg0, %c0_i32 : i32, i32, i32
  }
}

</mosaic_0001>

<bundles_post_ra>
// kernel: tpu_custom_call.1
= control target key start
LH: loop header
LB: loop body
LE: loop exit
PB: predicated region body
PF: predicated region fallthrough
CT: control target
= control target key end

     0   :  { %9 = vsyncpa [#allocation3], 0  ;;  %s284_s0 = inlined_call_operand.hbm [shape: f32[2,1024], index: 0, kind: input, shape index: {}]   ;;  %s285_s1 = inlined_call_operand.hbm [shape: f32[2,1024], index: 1, kind: input, shape index: {}]   ;;  %s286_s2 = inlined_call_operand.vmem [shape: f32[1,2,1], index: 2, kind: output, shape index: {0}]   ;;  %s287_s3 = inlined_call_operand.vmem [shape: f32[1,2,1], index: 3, kind: output, shape index: {1}]  }
   0x1   :  { %s20_s14 = sshll.u32 %s284_s0, 4  ;;  %s21_s14 = int_to_ptr.hbm [resolvable:$true] %s20_s14 }
   0x2   :  { %10 = vsyncpa [#allocation5], 0  ;;  %s217_s15 = smov [#allocation2]   ;;  %s35_s19 = sshll.u32 %s285_s1, 4  ;;  %s36_s19 = int_to_ptr.hbm [resolvable:$true] %s35_s19 }
   0x3   :  { %s22_s16 = sshll.u32 %s217_s15, 4  ;;  %s218_s20 = smov [#allocation4]   ;;  %s23_s16 = int_to_ptr.vmem [resolvable:$true] %s22_s16 }
   0x4   :  { %25 = dma.hbm_to_vmem [thread:$0]  %s21_s14, 256, %s23_s16, [#allocation3]  }
   0x5   :  { %s37_s21 = sshll.u32 %s218_s20, 4  ;;  %s38_s21 = int_to_ptr.vmem [resolvable:$true] %s37_s21 }
   0x6   :  { %40 = dma.hbm_to_vmem [thread:$0]  %s36_s19, 256, %s38_s21, [#allocation5]  }
   0x7   :  { %213 = dma.done.wait [#allocation3], 256  }
   0x8   :  { %214 = vsyncadd [#allocation3], 4294967040 }
   0x9   :  { %215 = dma.done.wait [#allocation5], 256  }
   0xa   :  { %216 = vsyncadd [#allocation5], 4294967040  ;;  %v53_v0 = vld [vmem:[#allocation2] sm:$0xff]  ;;  %v54_v1 = vld [vmem:[#allocation2 + $0x8] sm:$0xff]  ;;  %vm142_vm0 = vcmask 1024   ;;  %vm80_vm1 = vcmask 1041408  }
   0xb   :  { %v55_v2 = vld [vmem:[#allocation4] sm:$0xff]  ;;  %v56_v3 = vld [vmem:[#allocation4 + $0x8] sm:$0xff]  ;;  %v219_v6 = vmov 0.0  }
   0xc   :  { %v57_v4 = vmul.f32 %v55_v2, %v53_v0  ;;  %v58_v5 = vmul.f32 %v56_v3, %v54_v1  ;;  %143 = vst.msk [vmem:[%s286_s2] sm:$0x3] %vm142_vm0, %v219_v6  ;;  %v98_v9 = vadd.f32 %v55_v2, %v53_v0  ;;  %v99_v12 = vadd.f32 %v56_v3, %v54_v1 }
   0xd   :  { %144 = vst.msk [vmem:[%s287_s3] sm:$0x3] %vm142_vm0, %v219_v6 }
   0xe   :  { %61 = vst [vmem:[#allocation1] ss:$4 sm:$0xff] %v57_v4 }
   0xf   :  { %63 = vst [vmem:[#allocation1 + $0x20] ss:$4 sm:$0xff] %v58_v5 }
  0x13   :  { %v145_v55 = vld [vmem:[%s286_s2] sm:$0x3] }
  0x14   :  { %v149_v58 = vld [vmem:[%s287_s3] sm:$0x3] }
  0x15   :  { %v64_v7 = vld.sshfl [vmem:[#allocation1] sm:$0xff pattern:$0x73625140]  ;;  %v65_v8 = vld.sshfl [vmem:[#allocation1 + $0x8] sm:$0xff pattern:$0x73625140] }
  0x16   :  { %v66_v10 = vld.sshfl [vmem:[#allocation1 + $0x10] sm:$0xff pattern:$0x73625140]  ;;  %v67_v11 = vld.sshfl [vmem:[#allocation1 + $0x18] sm:$0xff pattern:$0x73625140] }
  0x17   :  { %v68_v13 = vld.sshfl [vmem:[#allocation1 + $0x20] sm:$0xff pattern:$0x73625140]  ;;  %v69_v14 = vld.sshfl [vmem:[#allocation1 + $0x28] sm:$0xff pattern:$0x73625140] }
  0x18   :  { %v70_v15 = vld.sshfl [vmem:[#allocation1 + $0x30] sm:$0xff pattern:$0x73625140]  ;;  %v71_v16 = vld.sshfl [vmem:[#allocation1 + $0x38] sm:$0xff pattern:$0x73625140] }
  0x19   :  { %v81_v17 = vsel %vm80_vm1, %v64_v7, 0.0  ;;  %v82_v18 = vsel %vm80_vm1, %v65_v8, 0.0  ;;  %v84_v19 = vsel %vm80_vm1, %v66_v10, 0.0  ;;  %102 = vst [vmem:[#allocation1] ss:$4 sm:$0xff] %v98_v9  ;;  %v86_v21 = vsel %vm80_vm1, %v67_v11, 0.0 }
  0x1a   :  { %v83_v20 = vadd.f32 %v82_v18, %v81_v17  ;;  %104 = vst [vmem:[#allocation1 + $0x20] ss:$4 sm:$0xff] %v99_v12  ;;  %v88_v23 = vsel %vm80_vm1, %v68_v13, 0.0  ;;  %v90_v25 = vsel %vm80_vm1, %v69_v14, 0.0  ;;  %v92_v27 = vsel %vm80_vm1, %v70_v15, 0.0 }
  0x1b   :  { %v94_v32 = vsel %vm80_vm1, %v71_v16, 0.0 }
  0x1c   :  { %v85_v22 = vadd.f32 %v84_v19, %v83_v20 }
  0x1e   :  { %v87_v24 = vadd.f32 %v86_v21, %v85_v22 }
  0x20   :  { %v89_v26 = vadd.f32 %v88_v23, %v87_v24  ;;  %v105_v28 = vld.sshfl [vmem:[#allocation1] sm:$0xff pattern:$0x73625140]  ;;  %v106_v29 = vld.sshfl [vmem:[#allocation1 + $0x8] sm:$0xff pattern:$0x73625140] }
  0x21   :  { %v107_v30 = vld.sshfl [vmem:[#allocation1 + $0x10] sm:$0xff pattern:$0x73625140]  ;;  %v108_v33 = vld.sshfl [vmem:[#allocation1 + $0x18] sm:$0xff pattern:$0x73625140] }
  0x22   :  { %v91_v31 = vadd.f32 %v90_v25, %v89_v26  ;;  %v121_v35 = vsel %vm80_vm1, %v105_v28, 0.0  ;;  %v122_v36 = vsel %vm80_vm1, %v106_v29, 0.0  ;;  %v124_v37 = vsel %vm80_vm1, %v107_v30, 0.0  ;;  %v109_v38 = vld.sshfl [vmem:[#allocation1 + $0x20] sm:$0xff pattern:$0x73625140] }
  0x23   :  { %v123_v39 = vadd.f32 %v122_v36, %v121_v35  ;;  %v126_v41 = vsel %vm80_vm1, %v108_v33, 0.0  ;;  %v110_v42 = vld.sshfl [vmem:[#allocation1 + $0x28] sm:$0xff pattern:$0x73625140]  ;;  %v128_v44 = vsel %vm80_vm1, %v109_v38, 0.0 }
  0x24   :  { %v93_v34 = vadd.f32 %v92_v27, %v91_v31  ;;  %v111_v45 = vld.sshfl [vmem:[#allocation1 + $0x30] sm:$0xff pattern:$0x73625140]  ;;  %v130_v47 = vsel %vm80_vm1, %v110_v42, 0.0 }
  0x25   :  { %v125_v43 = vadd.f32 %v124_v37, %v123_v39  ;;  %v112_v48 = vld.sshfl [vmem:[#allocation1 + $0x38] sm:$0xff pattern:$0x73625140]  ;;  %v132_v50 = vsel %vm80_vm1, %v111_v45, 0.0 }
  0x26   :  { %v95_v40 = vadd.f32 %v94_v32, %v93_v34  ;;  %v134_v52 = vsel %vm80_vm1, %v112_v48, 0.0 }
  0x27   :  { %v127_v46 = vadd.f32 %v126_v41, %v125_v43 }
  0x28   :  { %96 = vadd.xlane.f32.xlu0 %v95_v40 }
  0x29   :  { %v129_v49 = vadd.f32 %v128_v44, %v127_v46 }
  0x2b   :  { %v131_v51 = vadd.f32 %v130_v47, %v129_v49 }
  0x2d   :  { %v133_v53 = vadd.f32 %v132_v50, %v131_v51 }
  0x2f   :  { %v135_v54 = vadd.f32 %v134_v52, %v133_v53 }
  0x31   :  { %136 = vadd.xlane.f32.xlu0 %v135_v54 }
  0x9b   :  { %v97_v56 = vpop.xlane.xlu0 %96 }
  0x9c   :  { %v146_v57 = vadd.f32 %v145_v55, %v97_v56 }
  0x9e   :  { %148 = vst.msk [vmem:[%s286_s2] sm:$0x3] %vm142_vm0, %v146_v57 }
  0xa4   :  { %v137_v59 = vpop.xlane.xlu0 %136 }
  0xa5   :  { %v150_v60 = vadd.f32 %v149_v58, %v137_v59 }
  0xa7   :  { %151 = vst.msk [vmem:[%s287_s3] sm:$0x3] %vm142_vm0, %v150_v60 }
  0xa8   :  { %160 = vsyncpa [#allocation3], 1 }
  0xa9   :  { %161 = vsyncpa [#allocation5], 1 }

</bundles_post_ra>
